<compile_context>
chip_gen: v6e
topology: v6e:2x2x1
jax: 0.10.0
libtpu: 0.0.40
codegen_flags: <defaults>
</compile_context>

<pallas_src>
import jax
import jax.numpy as jnp
from jax import lax
from jax.experimental import pallas as pl
from jax.experimental.pallas import tpu as pltpu

HIDDEN_LAYERS = 2
HIDDEN_SIZE = 8
LANE = 128
MAX_BLOCK_M = 16384  # 16K rows: x tile 1 MiB f32, double-buffered 2 MiB


def _round_up(n, m):
    return ((n + m - 1) // m) * m


def _mlp_kernel(x_ref,
                w_in_ref, b_in_ref,
                w_h0_ref, b_h0_ref,
                w_h1_ref, b_h1_ref,
                w_out_ref, b_out_ref,
                oT_ref):
    """Fused 4-layer MLP forward, batch on the lane axis, f32 throughout.

    x_ref  : (block_m, input_dim)        natural-layout activation tile
    w_*    : (out_features, in_features) same layout as torch nn.Linear.weight
    b_*    : (out_features, 1)           broadcasts along the lane (batch) axis
    oT_ref : (output_dim, block_m)       lane-dense output slab
    """
    # Layer 1: contract x's feature (last) dim -> (hidden, block_m).
    # The implied transpose of the (block_m, input_dim) tile happens in-kernel
    # (XLU / transposed-operand MXU) instead of as a separate XLA pass over HBM.
    h = lax.dot_general(
        w_in_ref[...], x_ref[...],
        dimension_numbers=(((1,), (1,)), ((), ())),
        preferred_element_type=jnp.float32,
    ) + b_in_ref[...]
    h = jnp.maximum(h, 0.0)

    # Hidden layers: lane-dense (hidden, block_m) intermediates, f32 on the MXU.
    h = jnp.maximum(
        jnp.dot(w_h0_ref[...], h, preferred_element_type=jnp.float32)
        + b_h0_ref[...], 0.0)
    h = jnp.maximum(
        jnp.dot(w_h1_ref[...], h, preferred_element_type=jnp.float32)
        + b_h1_ref[...], 0.0)

    # Output layer (no ReLU), lane-dense store (unmasked vst).
    out = (jnp.dot(w_out_ref[...], h, preferred_element_type=jnp.float32)
           + b_out_ref[...])
    oT_ref[...] = out.astype(oT_ref.dtype)


def _choose_block_m(B, block_m):
    if block_m is not None:
        if block_m >= B:
            return B                       # single exact tile, nothing masked
        return max(LANE, _round_up(block_m, LANE))
    if B <= 512:
        return B                           # one exact tile; tiny batch
    # >= 2 tiles so v7x's two TensorCores both get work and the pipeline has
    # steps to overlap; big tiles amortize the ~0.35 us/step overhead.
    return min(MAX_BLOCK_M, _round_up((B + 1) // 2, LANE))


def mlp_forward(x, params, *, block_m=None):
    """x: (B, input_dim) float32. params: torch-layout weights (out,in), biases (out,1)."""
    B, input_dim = x.shape
    hidden_dim = params["w_in"].shape[0]
    output_dim = params["w_out"].shape[0]

    block_m = _choose_block_m(B, block_m)
    grid = (pl.cdiv(B, block_m),)  # trailing partial tile is masked on store

    def rep(shape):
        # Small weights/biases: block == full array, same block every step
        # (stays resident in VMEM, no re-DMA).
        return pl.BlockSpec(shape, lambda i: (0, 0))

    in_specs = [
        pl.BlockSpec((block_m, input_dim), lambda i: (i, 0)),   # natural x tile
        rep((hidden_dim, input_dim)), rep((hidden_dim, 1)),     # input layer
        rep((hidden_dim, hidden_dim)), rep((hidden_dim, 1)),    # hidden 0
        rep((hidden_dim, hidden_dim)), rep((hidden_dim, 1)),    # hidden 1
        rep((output_dim, hidden_dim)), rep((output_dim, 1)),    # output layer
    ]
    out_spec = pl.BlockSpec((output_dim, block_m), lambda i: (0, i))

    outT = pl.pallas_call(
        _mlp_kernel,
        out_shape=jax.ShapeDtypeStruct((output_dim, B), jnp.float32),
        grid_spec=pltpu.PrefetchScalarGridSpec(
            num_scalar_prefetch=0,
            grid=grid,
            in_specs=in_specs,
            out_specs=out_spec,
        ),
        compiler_params=pltpu.CompilerParams(
            dimension_semantics=("parallel",),
            vmem_limit_bytes=32 * 1024 * 1024,  # safe on v5e/v6e/v7x
        ),
    )(x,
      params["w_in"], params["b_in"],
      params["w_h0"], params["b_h0"],
      params["w_h1"], params["b_h1"],
      params["w_out"], params["b_out"])

    # Back to the PyTorch (B, output_dim) convention.  Deliberate: this pass
    # only touches the small output stream (output_dim * B floats).
    return jnp.transpose(outT)


def init_params(key, input_dim, output_dim, hidden_dim=HIDDEN_SIZE):
    """Init mimicking nn.Linear's U(-1/sqrt(fan_in), 1/sqrt(fan_in)).

    Weights stored (out_features, in_features) — same as torch nn.Linear.weight.
    Biases stored (out_features, 1) so they broadcast along the lane (batch) axis.
    """
    def linear(k, fan_in, fan_out):
        kw, kb = jax.random.split(k)
        bound = 1.0 / jnp.sqrt(fan_in)
        w = jax.random.uniform(kw, (fan_out, fan_in), jnp.float32, -bound, bound)
        b = jax.random.uniform(kb, (fan_out, 1), jnp.float32, -bound, bound)
        return w, b

    k0, k1, k2, k3 = jax.random.split(key, 4)
    w_in, b_in = linear(k0, input_dim, hidden_dim)
    w_h0, b_h0 = linear(k1, hidden_dim, hidden_dim)
    w_h1, b_h1 = linear(k2, hidden_dim, hidden_dim)
    w_out, b_out = linear(k3, hidden_dim, output_dim)
    return dict(w_in=w_in, b_in=b_in,
                w_h0=w_h0, b_h0=b_h0,
                w_h1=w_h1, b_h1=b_h1,
                w_out=w_out, b_out=b_out)


def mlp_reference(x, p):
    h = jnp.maximum(x @ p["w_in"].T + p["b_in"].T, 0.0)
    h = jnp.maximum(h @ p["w_h0"].T + p["b_h0"].T, 0.0)
    h = jnp.maximum(h @ p["w_h1"].T + p["b_h1"].T, 0.0)
    return h @ p["w_out"].T + p["b_out"].T


if __name__ == "__main__":
    key = jax.random.PRNGKey(0)
    k_x, k_p, k_x2 = jax.random.split(key, 3)

    batch = 8
    input_dim = 16
    output_dim = 4

    params = init_params(k_p, input_dim, output_dim, hidden_dim=HIDDEN_SIZE)

    # Small case: single exact tile (block_m == B, nothing masked).
    x = jax.random.normal(k_x, (batch, input_dim), jnp.float32)
    out = jax.block_until_ready(mlp_forward(x, params))
    ref = mlp_reference(x, params)
    assert out.shape == (batch, output_dim)
    # f32 end-to-end -> tight tolerance vs the f32 reference
    assert jnp.allclose(out, ref, atol=1e-5, rtol=1e-5), \
        float(jnp.max(jnp.abs(out - ref)))

    # Default tiling on a larger batch: 2 tiles, trailing partial (masked) tile.
    x2 = jax.random.normal(k_x2, (600, input_dim), jnp.float32)
    out2 = jax.block_until_ready(mlp_forward(x2, params))
    ref2 = mlp_reference(x2, params)
    assert out2.shape == (600, output_dim)
    assert jnp.allclose(out2, ref2, atol=1e-5, rtol=1e-5), \
        float(jnp.max(jnp.abs(out2 - ref2)))

    # Explicit block_m: 3 tiles, exercises grid > 2 and the partial last tile.
    out3 = jax.block_until_ready(mlp_forward(x2, params, block_m=256))
    assert out3.shape == (600, output_dim)
    assert jnp.allclose(out3, ref2, atol=1e-5, rtol=1e-5), \
        float(jnp.max(jnp.abs(out3 - ref2)))

    print("KERNEL_OK")
</pallas_src>

<mosaic_0001>
module attributes {stable_mosaic.version = 11 : i64} {
  func.func @_mlp_kernel(%arg0: i32, %arg1: memref<8x16xf32, #tpu.memory_space<vmem>>, %arg2: memref<8x16xf32, #tpu.memory_space<vmem>>, %arg3: memref<8x1xf32, #tpu.memory_space<vmem>>, %arg4: memref<8x8xf32, #tpu.memory_space<vmem>>, %arg5: memref<8x1xf32, #tpu.memory_space<vmem>>, %arg6: memref<8x8xf32, #tpu.memory_space<vmem>>, %arg7: memref<8x1xf32, #tpu.memory_space<vmem>>, %arg8: memref<4x8xf32, #tpu.memory_space<vmem>>, %arg9: memref<4x1xf32, #tpu.memory_space<vmem>>, %arg10: memref<4x8xf32, #tpu.memory_space<vmem>>) attributes {dimension_semantics = [#tpu.dimension_semantics<parallel>], iteration_bounds = array<i64: 1>, scalar_prefetch = 0 : i64, scratch_operands = 0 : i64, tpu.core_type = #tpu.core_type<tc>, window_params = [{transform_indices = @transform_0, window_bounds = array<i64: 8, 16>}, {pipeline_mode = #tpu.pipeline_mode<synchronous>, transform_indices = @transform_1, window_bounds = array<i64: 8, 16>}, {pipeline_mode = #tpu.pipeline_mode<synchronous>, transform_indices = @transform_2, window_bounds = array<i64: 8, 1>}, {pipeline_mode = #tpu.pipeline_mode<synchronous>, transform_indices = @transform_3, window_bounds = array<i64: 8, 8>}, {pipeline_mode = #tpu.pipeline_mode<synchronous>, transform_indices = @transform_4, window_bounds = array<i64: 8, 1>}, {pipeline_mode = #tpu.pipeline_mode<synchronous>, transform_indices = @transform_5, window_bounds = array<i64: 8, 8>}, {pipeline_mode = #tpu.pipeline_mode<synchronous>, transform_indices = @transform_6, window_bounds = array<i64: 8, 1>}, {pipeline_mode = #tpu.pipeline_mode<synchronous>, transform_indices = @transform_7, window_bounds = array<i64: 4, 8>}, {pipeline_mode = #tpu.pipeline_mode<synchronous>, transform_indices = @transform_8, window_bounds = array<i64: 4, 1>}, {transform_indices = @transform_9, window_bounds = array<i64: 4, 8>}]} {
    %c0 = arith.constant 0 : index
    %c0_0 = arith.constant 0 : index
    %0 = vector.load %arg2[%c0, %c0_0] : memref<8x16xf32, #tpu.memory_space<vmem>>, vector<8x16xf32>
    %c0_1 = arith.constant 0 : index
    %c0_2 = arith.constant 0 : index
    %1 = vector.load %arg1[%c0_1, %c0_2] : memref<8x16xf32, #tpu.memory_space<vmem>>, vector<8x16xf32>
    %cst = arith.constant dense<0.000000e+00> : vector<8x8xf32>
    %2 = tpu.matmul %0, %1, %cst {dimension_numbers = #tpu.dot_dimension_numbers<[1], [1], [0], [0], [0, 0, 1, 0], [], []>} : vector<8x16xf32>, vector<8x16xf32>, vector<8x8xf32> -> vector<8x8xf32>
    %c0_3 = arith.constant 0 : index
    %c0_4 = arith.constant 0 : index
    %3 = vector.load %arg3[%c0_3, %c0_4] : memref<8x1xf32, #tpu.memory_space<vmem>>, vector<8x1xf32>
    %4 = vector.broadcast %3 : vector<8x1xf32> to vector<8x8xf32>
    %5 = arith.addf %2, %4 : vector<8x8xf32>
    %cst_5 = arith.constant 0.000000e+00 : f32
    %6 = vector.broadcast %cst_5 : f32 to vector<8x8xf32>
    %7 = arith.maximumf %5, %6 : vector<8x8xf32>
    %c0_6 = arith.constant 0 : index
    %c0_7 = arith.constant 0 : index
    %8 = vector.load %arg4[%c0_6, %c0_7] : memref<8x8xf32, #tpu.memory_space<vmem>>, vector<8x8xf32>
    %cst_8 = arith.constant dense<0.000000e+00> : vector<8x8xf32>
    %9 = tpu.matmul %8, %7, %cst_8 {dimension_numbers = #tpu.dot_dimension_numbers<[1], [0], [0], [1], [0, 0, 1, 1], [], []>} : vector<8x8xf32>, vector<8x8xf32>, vector<8x8xf32> -> vector<8x8xf32>
    %c0_9 = arith.constant 0 : index
    %c0_10 = arith.constant 0 : index
    %10 = vector.load %arg5[%c0_9, %c0_10] : memref<8x1xf32, #tpu.memory_space<vmem>>, vector<8x1xf32>
    %11 = vector.broadcast %10 : vector<8x1xf32> to vector<8x8xf32>
    %12 = arith.addf %9, %11 : vector<8x8xf32>
    %cst_11 = arith.constant 0.000000e+00 : f32
    %13 = vector.broadcast %cst_11 : f32 to vector<8x8xf32>
    %14 = arith.maximumf %12, %13 : vector<8x8xf32>
    %c0_12 = arith.constant 0 : index
    %c0_13 = arith.constant 0 : index
    %15 = vector.load %arg6[%c0_12, %c0_13] : memref<8x8xf32, #tpu.memory_space<vmem>>, vector<8x8xf32>
    %cst_14 = arith.constant dense<0.000000e+00> : vector<8x8xf32>
    %16 = tpu.matmul %15, %14, %cst_14 {dimension_numbers = #tpu.dot_dimension_numbers<[1], [0], [0], [1], [0, 0, 1, 1], [], []>} : vector<8x8xf32>, vector<8x8xf32>, vector<8x8xf32> -> vector<8x8xf32>
    %c0_15 = arith.constant 0 : index
    %c0_16 = arith.constant 0 : index
    %17 = vector.load %arg7[%c0_15, %c0_16] : memref<8x1xf32, #tpu.memory_space<vmem>>, vector<8x1xf32>
    %18 = vector.broadcast %17 : vector<8x1xf32> to vector<8x8xf32>
    %19 = arith.addf %16, %18 : vector<8x8xf32>
    %cst_17 = arith.constant 0.000000e+00 : f32
    %20 = vector.broadcast %cst_17 : f32 to vector<8x8xf32>
    %21 = arith.maximumf %19, %20 : vector<8x8xf32>
    %c0_18 = arith.constant 0 : index
    %c0_19 = arith.constant 0 : index
    %22 = vector.load %arg8[%c0_18, %c0_19] : memref<4x8xf32, #tpu.memory_space<vmem>>, vector<4x8xf32>
    %cst_20 = arith.constant dense<0.000000e+00> : vector<4x8xf32>
    %23 = tpu.matmul %22, %21, %cst_20 {dimension_numbers = #tpu.dot_dimension_numbers<[1], [0], [0], [1], [0, 0, 1, 1], [], []>} : vector<4x8xf32>, vector<8x8xf32>, vector<4x8xf32> -> vector<4x8xf32>
    %c0_21 = arith.constant 0 : index
    %c0_22 = arith.constant 0 : index
    %24 = vector.load %arg9[%c0_21, %c0_22] : memref<4x1xf32, #tpu.memory_space<vmem>>, vector<4x1xf32>
    %25 = vector.broadcast %24 : vector<4x1xf32> to vector<4x8xf32>
    %26 = arith.addf %23, %25 : vector<4x8xf32>
    %c0_23 = arith.constant 0 : index
    %c0_24 = arith.constant 0 : index
    %27 = vector.load %arg10[%c0_23, %c0_24] : memref<4x8xf32, #tpu.memory_space<vmem>>, vector<4x8xf32>
    tpu.vector_store %arg10[%c0_23, %c0_24], %26 {strides = array<i32>} : memref<4x8xf32, #tpu.memory_space<vmem>>, vector<4x8xf32>,
    return
  }
  func.func @transform_0(%arg0: i32) -> (i32, i32) {
    %c0_i32 = arith.constant 0 : i32
    %c0_i32_0 = arith.constant 0 : i32
    return %arg0, %c0_i32 : i32, i32
  }
  func.func @transform_1(%arg0: i32) -> (i32, i32) {
    %c0_i32 = arith.constant 0 : i32
    %c0_i32_0 = arith.constant 0 : i32
    %c0_i32_1 = arith.constant 0 : i32
    return %c0_i32, %c0_i32_0 : i32, i32
  }
  func.func @transform_2(%arg0: i32) -> (i32, i32) {
    %c0_i32 = arith.constant 0 : i32
    %c0_i32_0 = arith.constant 0 : i32
    %c0_i32_1 = arith.constant 0 : i32
    return %c0_i32, %c0_i32_0 : i32, i32
  }
  func.func @transform_3(%arg0: i32) -> (i32, i32) {
    %c0_i32 = arith.constant 0 : i32
    %c0_i32_0 = arith.constant 0 : i32
    %c0_i32_1 = arith.constant 0 : i32
    return %c0_i32, %c0_i32_0 : i32, i32
  }
  func.func @transform_4(%arg0: i32) -> (i32, i32) {
    %c0_i32 = arith.constant 0 : i32
    %c0_i32_0 = arith.constant 0 : i32
    %c0_i32_1 = arith.constant 0 : i32
    return %c0_i32, %c0_i32_0 : i32, i32
  }
  func.func @transform_5(%arg0: i32) -> (i32, i32) {
    %c0_i32 = arith.constant 0 : i32
    %c0_i32_0 = arith.constant 0 : i32
    %c0_i32_1 = arith.constant 0 : i32
    return %c0_i32, %c0_i32_0 : i32, i32
  }
  func.func @transform_6(%arg0: i32) -> (i32, i32) {
    %c0_i32 = arith.constant 0 : i32
    %c0_i32_0 = arith.constant 0 : i32
    %c0_i32_1 = arith.constant 0 : i32
    return %c0_i32, %c0_i32_0 : i32, i32
  }
  func.func @transform_7(%arg0: i32) -> (i32, i32) {
    %c0_i32 = arith.constant 0 : i32
    %c0_i32_0 = arith.constant 0 : i32
    %c0_i32_1 = arith.constant 0 : i32
    return %c0_i32, %c0_i32_0 : i32, i32
  }
  func.func @transform_8(%arg0: i32) -> (i32, i32) {
    %c0_i32 = arith.constant 0 : i32
    %c0_i32_0 = arith.constant 0 : i32
    %c0_i32_1 = arith.constant 0 : i32
    return %c0_i32, %c0_i32_0 : i32, i32
  }
  func.func @transform_9(%arg0: i32) -> (i32, i32) {
    %c0_i32 = arith.constant 0 : i32
    %c0_i32_0 = arith.constant 0 : i32
    return %c0_i32, %arg0 : i32, i32
  }
}

</mosaic_0001>

<bundles_post_ra>
// kernel: tpu_custom_call.1
= control target key start
LH: loop header
LB: loop body
LE: loop exit
PB: predicated region body
PF: predicated region fallthrough
CT: control target
= control target key end

     0   :  { %vm41_vm0 = vcmask 130048   ;;  %v439_v1 = vmov 0.0   ;;  %vm440_vm1 = vmmov 0   ;;  %s532_s0 = inlined_call_operand.vmem [shape: f32[8,16], index: 0, kind: input, shape index: {}]   ;;  %s533_s1 = inlined_call_operand.vmem [shape: f32[8,16], index: 1, kind: input, shape index: {}]   ;;  %s534_s2 = inlined_call_operand.vmem [shape: f32[8,1], index: 2, kind: input, shape index: {}]   ;;  %s535_s3 = inlined_call_operand.vmem [shape: f32[8,8], index: 3, kind: input, shape index: {}]   ;;  %s536_s4 = inlined_call_operand.vmem [shape: f32[8,1], index: 4, kind: input, shape index: {}]   ;;  %s537_s5 = inlined_call_operand.vmem [shape: f32[8,8], index: 5, kind: input, shape index: {}]   ;;  %s538_s6 = inlined_call_operand.vmem [shape: f32[8,1], index: 6, kind: input, shape index: {}]   ;;  %s539_s7 = inlined_call_operand.vmem [shape: f32[4,8], index: 7, kind: input, shape index: {}]   ;;  %s540_s8 = inlined_call_operand.vmem [shape: f32[4,1], index: 8, kind: input, shape index: {}]   ;;  %s541_s9 = inlined_call_operand.hbm [shape: f32[4,8], index: 9, kind: output, shape index: {}]  }
   0x1   :  { %v34_v0 = vld [vmem:[%s532_s0] sm:$0xff]  ;;  %391 = vmatprep.subr.mxu0 %v439_v1  ;;  %393 = vmatprep.mubr.msk.f32.mxu0 %vm440_vm1, %v439_v1 }
   0x2   :  { %v35_v2 = vld [vmem:[%s534_s2] sm:$0xff] }
   0x3   :  { %14 = vsyncpa [#allocation3], 0  ;;  %392 = vmatpush3.xpose.msk.msra.mxu0 %vm41_vm0, %v34_v0  ;;  %v33_v3 = vld [vmem:[%s533_s1] sm:$0xff]  ;;  %v441_v4 = vmov 0   ;;  %396 = vmatprep.subr.mxu1 %v439_v1  ;;  %vm126_vm2 = vcmask 64512   ;;  %s442_s20 = smov [#allocation2]  }
   0x4   :  { %415 = vset.pattern.permute.xlu0 %v441_v4  ;;  %v120_v5 = vld [vmem:[%s536_s4] sm:$0xff]  ;;  %398 = vmatprep.mubr.msk.f32.mxu1 %vm440_vm1, %v439_v1  ;;  %s370_s21 = sshll.u32 %s442_s20, 4  ;;  %vm362_vm3 = vcmask 60416   ;;  %s371_s21 = int_to_ptr.vmem [resolvable:$true] %s370_s21 }
   0x5   :  { %38 = vperm.xlu0 %415, %v35_v2   ;;  %416 = vset.pattern.permute.xlu1 %v441_v4  ;;  %v119_v11 = vld [vmem:[%s535_s3] sm:$0xff]  ;;  %p422_p1 = scmp.lt.s32.totalorder %s371_s21, %s371_s21 }
   0x6   :  { %394 = vmatmul.mubr.msk.f32.vlgmr.msra.gmra.mxu0 %vm41_vm0, %v33_v3  ;;  %406 = vmatprep.subr.mxu0 %v439_v1  ;;  %v202_v12 = vld [vmem:[%s538_s6] sm:$0xff] }
   0x7   :  { %408 = vmatprep.mubr.msk.f32.mxu0 %vm440_vm1, %v439_v1  ;;  %205 = vperm.xlu1 %416, %v202_v12   ;;  %v283_v13 = vld [vmem:[%s540_s8] sm:$0xf] }
   0x8   :  { %v201_v19 = vld [vmem:[%s537_s5] sm:$0xff]  ;;  %s417_s5 = scalar_lea.vmem %s371_s21, 64 }
   0x9   :  { %123 = vperm.xlu0 %415, %v120_v5   ;;  %v282_v25 = vld [vmem:[%s539_s7] sm:$0xf]  ;;  %p418_p0 = scmp.ne.s32.totalorder %s371_s21, %s417_s5  ;;  %p423_p2 = scmp.lt.s32.totalorder %s417_s5, %s417_s5 }
   0xb   :  { %286 = vperm.xlu1 %416, %v283_v13   ;;  %p424_p3 = por %p423_p2, %p422_p1 }
   0xd   :  { %p425_p4 = pnand %p424_p3, %p418_p0 }
  0x80   :  { %v39_v6 = vpop.permute.xlu0 %38 }
  0x82   :  { %v206_v20 = vpop.permute.xlu1 %205 }
  0x84   :  { %v124_v14 = vpop.permute.xlu0 %123 }
  0x86   :  { %v287_v26 = vpop.permute.xlu1 %286 }
  0xc6   :  { %v114_v7 = vpop.f32.mrf.mxu0 }
  0xc7   :  { %v115_v8 = vadd.f32 %v114_v7, %v39_v6 }
  0xc8   :  { %v395_v9 = vpop.f32.mrf.mxu0 }
  0xc9   :  { %v118_v10 = vmax.f32 %v115_v8, 0.0 }
  0xcb   :  { %397 = vmatpush3.msra.mxu1 %v118_v10 }
  0xcc   :  { %399 = vmatmul.mubr.msk.f32.vlgmr.msra.gmra.mxu1 %vm126_vm2, %v119_v11  ;;  %401 = vmatprep.subr.mxu1 %v439_v1 }
  0xcd   :  { %403 = vmatprep.mubr.msk.f32.mxu1 %vm440_vm1, %v439_v1 }
 0x18c   :  { %v196_v15 = vpop.f32.mrf.mxu1 }
 0x18d   :  { %v197_v16 = vadd.f32 %v196_v15, %v124_v14 }
 0x18e   :  { %v400_v17 = vpop.f32.mrf.mxu1 }
 0x18f   :  { %v200_v18 = vmax.f32 %v197_v16, 0.0 }
 0x191   :  { %402 = vmatpush3.msra.mxu1 %v200_v18 }
 0x192   :  { %404 = vmatmul.mubr.msk.f32.vlgmr.msra.gmra.mxu1 %vm126_vm2, %v201_v19 }
 0x252   :  { %v277_v21 = vpop.f32.mrf.mxu1 }
 0x253   :  { %v278_v22 = vadd.f32 %v277_v21, %v206_v20 }
 0x254   :  { %v405_v23 = vpop.f32.mrf.mxu1 }
 0x255   :  { %v281_v24 = vmax.f32 %v278_v22, 0.0 }
 0x257   :  { %407 = vmatpush3.msra.mxu0 %v281_v24 }
 0x258   :  { %409 = vmatmul.mubr.msk.f32.vlgmr.msra.gmra.mxu0 %vm126_vm2, %v282_v25 }
 0x318   :  { %v358_v27 = vpop.f32.mrf.mxu0 }
 0x319   :  { %v359_v28 = vadd.f32 %v358_v27, %v287_v26 }
 0x31a   :  { %v410_v29 = vpop.f32.mrf.mxu0 }
 0x31b   :  { %363 = vst.msk [vmem:[#allocation2] sm:$0xf] %vm362_vm3, %v359_v28 }
 0x31c   :  { %428 = shalt.err (!%p425_p4)
}
 0x31d   :  { %373 = dma.vmem_to_hbm [thread:$0]  %s371_s21, 64, %s541_s9, [#allocation3]  }
 0x31e   :  { %437 = dma.done.wait [#allocation3], 64  }
 0x31f   :  { %438 = vsyncadd [#allocation3], 4294967232 }
 0x320   :  { %377 = vsyncpa [#allocation3], 1 }

</bundles_post_ra>
